<compile_context>
chip_gen: v6e
topology: v6e:2x2x1
jax: 0.10.0
libtpu: 0.0.40
codegen_flags: <defaults>
</compile_context>

<pallas_src>
import functools

import jax
import jax.numpy as jnp
import numpy as np
from jax.experimental import pallas as pl
from jax.experimental.pallas import tpu as pltpu

# Small shapes consistent with the module's forward().
N = 2            # batch
H = 32           # hidden_size
A = 16           # action_size (action-embedding dim)
K = 8            # number of candidate actions (y.shape[1]); K*A == 128
LEN_FEATURE = 4  # len_feature argument
TEMP = 0.3       # RelaxedOneHotCategorical temperature

# ---- LHS activation-slab lane offsets (x rows of the (2N, 128) slab) ----
L_X = 0          # lanes [0, H)   : x (encode history, L = 1)
L_ONE = H        # lane 32        : constant 1.0 (folds fc1 bias into the matmul)
L_U = H + 1      # lanes 33..34   : uniform noise for the Gumbel rsample
L_MASK = H + 3   # lanes 35..42   : 1.0 where k < len_feature else 0.0
# y rows carry y.reshape(N, K*A) across all 128 lanes.

# ---- RHS1 / RHS2 column layout (width 320) ----
C_ADV = 0            # cols [0, K*H)      : per-candidate advantage block
C_VAL = K * H        # cols [256, 288)    : fc2_value
C_H = K * H + H      # cols [288, ...)    : fc1 (RHS1) / `out` head (RHS2)
W_RHS = K * H + 2 * H  # 320

# ---- packed output slab lanes ((N, 12)) ----
O_OUT = 0   # 2 lanes : out
O_AV = 2    # 2 lanes : action_value_ (relaxed-categorical sample)
O_QSA = 4   # K lanes : qsa
O_W = 4 + K


def dqn_kernel(lhs_ref, rhs1_ref, rhs2_ref, rhs3_ref, o_ref):
    n = lhs_ref.shape[0] // 2
    lhs = lhs_ref[...]                                   # (2N, 128)
    u = lhs[0:n, L_U:L_U + 2]                            # (N, 2) uniform noise
    mask = lhs[0:n, L_MASK:L_MASK + K]                   # (N, K) len_feature mask

    # ---- MXU pass 1 (fused): x rows -> fc1(x)+b1 in cols [288,320);
    #      y rows -> fc2_advantage y-contribution, per-candidate, in cols [0,256).
    #      (cols [256,288) of RHS1 are zero; cross terms are discarded.)
    r1 = jnp.dot(lhs, rhs1_ref[...], preferred_element_type=jnp.float32)  # (2N, 320)
    h = jnp.maximum(r1[0:n, C_H:C_H + H], 0.0)           # (N, H)  relu(fc1(x) + b1)
    hy = r1[n:2 * n, 0:C_H]                              # (N, 288) [y-adv part | zeros]

    # ---- MXU pass 2 (fused heads sharing h):
    #      cols [0,256)  : fc2_advantage h-part tiled K times (+ ba)
    #      cols [256,288): fc2_value(h) pre-ReLU (+ bv)
    #      cols [288,290): `out` head (+ bout)
    z = (jnp.dot(h, rhs2_ref[0:H, :], preferred_element_type=jnp.float32)
         + rhs2_ref[H:H + 1, :])                         # (N, 320)
    out = z[:, C_H:C_H + 2]                              # (N, 2)

    # ---- 2-class softmax -> Gumbel rsample -> 2-class softmax (sigmoid identity).
    # softmax(out) is passed as the relaxed-categorical "logits" to match the
    # PyTorch module; torch's internal log-normalization is a per-row constant
    # that cancels in the final softmax, so results are identical.
    d = out[:, 0:1] - out[:, 1:2]
    p0 = 1.0 / (1.0 + jnp.exp(-d))                       # softmax(out)[:, 0:1]
    eps = jnp.float32(1e-10)
    uc = jnp.clip(u, eps, 1.0 - eps)
    g = -jnp.log(-jnp.log(uc))                           # Gumbel(0, 1) noise
    s = (2.0 * p0 - 1.0 + g[:, 0:1] - g[:, 1:2]) * jnp.float32(1.0 / TEMP)
    av0 = 1.0 / (1.0 + jnp.exp(-s))                      # relaxed sample, class 0
    av1 = 1.0 - av0

    # ---- MXU pass 3: advantage head (block-diag out_advantage) and value head
    #      (out_value) for the whole batch in ONE push.
    lhs3 = jnp.maximum(hy + z[:, 0:C_H], 0.0)            # (N, 288) [relu(adv feats) | relu(fc2_value)]
    r3 = (jnp.dot(lhs3, rhs3_ref[0:C_H, :], preferred_element_type=jnp.float32)
          + rhs3_ref[C_H:C_H + 1, :])                    # (N, K+1)
    adv = r3[:, 0:K]                                     # (N, K)
    value = r3[:, K:K + 1]                               # (N, 1)
    qsa = adv + value - jnp.mean(adv, axis=-1, keepdims=True)
    scale = mask * av0 + (1.0 - mask) * av1
    qsa = qsa * scale

    # ---- single full-width store of the packed (N, 12) result.
    o_ref[...] = jnp.concatenate([out, av0, av1, qsa], axis=1)
    # TODO(synk): choose_action=False branch (action_value gather against jiexian) not implemented.


def pack_params(params):
    """Build the three matmul RHS slabs.  Run ONCE per parameter update, on the
    host, outside the per-step forward path."""
    (w1, b1, wout, bout, wv, bv, wov, bov, wa, ba, woa, boa) = [
        np.asarray(t, np.float32) for t in params]

    # RHS1 (128, 320): contraction over the 128 LHS-slab lanes.
    rhs1 = np.zeros((K * A, W_RHS), np.float32)
    wyt = wa[:, H:].T                                        # (A, H) y-part of fc2_advantage
    for k in range(K):
        rhs1[k * A:(k + 1) * A, k * H:(k + 1) * H] = wyt     # block-diag per candidate
    rhs1[0:H, C_H:C_H + H] = w1.T                            # fc1
    rhs1[L_ONE, C_H:C_H + H] = b1[0]                         # fc1 bias via the constant-1 lane

    # RHS2 (H+1, 320): heads that share h; last row is the bias row.
    rhs2 = np.zeros((H + 1, W_RHS), np.float32)
    rhs2[0:H, 0:K * H] = np.tile(wa[:, :H].T, (1, K))        # adv h-part, tiled per candidate
    rhs2[H, 0:K * H] = np.tile(ba[0], K)
    rhs2[0:H, C_VAL:C_VAL + H] = wv.T
    rhs2[H, C_VAL:C_VAL + H] = bv[0]
    rhs2[0:H, C_H:C_H + 2] = wout.T
    rhs2[H, C_H:C_H + 2] = bout[0]

    # RHS3 (289, K+1): block-diag out_advantage | out_value column; bias row last.
    rhs3 = np.zeros((C_H + 1, K + 1), np.float32)
    for k in range(K):
        rhs3[k * H:(k + 1) * H, k] = woa[0]
    rhs3[K * H:K * H + H, K] = wov[0]
    rhs3[C_H, 0:K] = boa[0, 0]
    rhs3[C_H, K] = bov[0, 0]

    return jnp.asarray(rhs1), jnp.asarray(rhs2), jnp.asarray(rhs3)


@functools.partial(jax.jit, static_argnames=("len_feature",))
def dqn_forward(x_nld, y, u, rhs1, rhs2, rhs3, len_feature):
    """x_nld: (N,1,H) f32, y: (N,K,A), u: (N,2) uniform noise; rhs* from pack_params.
    Returns (action_value_, qsa, out) of shapes (N,2), (N,K), (N,2)."""
    n = x_nld.shape[0]
    x = x_nld[:, 0, :]                                       # (N, H), L == 1
    mask = jnp.broadcast_to(
        (jnp.arange(K) < len_feature).astype(jnp.float32), (n, K))
    ones = jnp.ones((n, 1), jnp.float32)
    pad = jnp.zeros((n, K * A - (H + 1 + 2 + K)), jnp.float32)
    x_rows = jnp.concatenate([x, ones, u, mask, pad], axis=1)     # (N, 128)
    lhs = jnp.concatenate([x_rows, y.reshape(n, K * A)], axis=0)  # (2N, 128)

    o = pl.pallas_call(
        dqn_kernel,
        out_shape=jax.ShapeDtypeStruct((n, O_W), jnp.float32),
        in_specs=[pl.BlockSpec(memory_space=pltpu.MemorySpace.VMEM)] * 4,
        out_specs=pl.BlockSpec(memory_space=pltpu.MemorySpace.VMEM),
    )(lhs, rhs1, rhs2, rhs3)

    return o[:, O_AV:O_AV + 2], o[:, O_QSA:O_QSA + K], o[:, O_OUT:O_OUT + 2]


def init_params(key):
    ks = jax.random.split(key, 12)
    nrm = lambda k, shp: 0.1 * jax.random.normal(k, shp, jnp.float32)
    w1   = nrm(ks[0], (H, H));       b1   = nrm(ks[1], (1, H))
    wout = nrm(ks[2], (2, H));       bout = nrm(ks[3], (1, 2))
    wv   = nrm(ks[4], (H, H));       bv   = nrm(ks[5], (1, H))
    wov  = nrm(ks[6], (1, H));       bov  = nrm(ks[7], (1, 1))
    wa   = nrm(ks[8], (H, H + A));   ba   = nrm(ks[9], (1, H))
    woa  = nrm(ks[10], (1, H));      boa  = nrm(ks[11], (1, 1))
    return (w1, b1, wout, bout, wv, bv, wov, bov, wa, ba, woa, boa)


def dqn_ref(x_nld, y, u, params, len_feature):
    """Pure-JAX reference mirroring the PyTorch forward (choose_action=True)."""
    (w1, b1, wout, bout, wv, bv, wov, bov, wa, ba, woa, boa) = params
    x = x_nld[:, 0, :]
    h = jax.nn.relu(x @ w1.T + b1)
    out = h @ wout.T + bout
    probs = jax.nn.softmax(out, axis=-1)
    uc = jnp.clip(u, 1e-10, 1.0 - 1e-10)
    g = -jnp.log(-jnp.log(uc))
    av = jax.nn.softmax((probs + g) / TEMP, axis=-1)
    hv = jax.nn.relu(h @ wv.T + bv)
    value = hv @ wov.T + bov
    xr = jnp.broadcast_to(h[:, None, :], (x.shape[0], y.shape[1], H))
    sca = jnp.concatenate([xr, y], axis=2)
    ha = jax.nn.relu(jnp.einsum('nkc,hc->nkh', sca, wa) + ba)
    adv = (jnp.einsum('nkh,oh->nko', ha, woa) + boa)[..., 0]
    qsa = adv + value - adv.mean(axis=1, keepdims=True)
    kidx = jnp.arange(y.shape[1])[None, :]
    scale = jnp.where(kidx < len_feature, av[:, 0:1], av[:, 1:2])
    return av, qsa * scale, out


if __name__ == "__main__":
    key = jax.random.PRNGKey(0)
    kx, ky, ku, kp = jax.random.split(key, 4)
    x = jax.random.normal(kx, (N, 1, H), jnp.float32)        # [N, L=1, D] like PyTorch
    y = jax.random.normal(ky, (N, K, A), jnp.float32)        # [N, K, D_action]
    u = jax.random.uniform(ku, (N, 2), dtype=jnp.float32)    # uniform noise for rsample
    params = init_params(kp)

    # Param packing happens once per parameter update, OUTSIDE the forward path.
    rhs1, rhs2, rhs3 = pack_params(params)

    av, qsa, out = dqn_forward(x, y, u, rhs1, rhs2, rhs3, len_feature=LEN_FEATURE)
    jax.block_until_ready((av, qsa, out))

    av_r, qsa_r, out_r = dqn_ref(x, y, u, params, LEN_FEATURE)
    assert av.shape == (N, 2) and qsa.shape == (N, K) and out.shape == (N, 2)
    np.testing.assert_allclose(np.asarray(out), np.asarray(out_r), rtol=2e-2, atol=2e-2)
    np.testing.assert_allclose(np.asarray(av), np.asarray(av_r), rtol=2e-2, atol=2e-2)
    np.testing.assert_allclose(np.asarray(qsa), np.asarray(qsa_r), rtol=2e-2, atol=2e-2)
    print("KERNEL_OK")
</pallas_src>

<mosaic_0001>
module attributes {stable_mosaic.version = 11 : i64} {
  func.func @dqn_kernel(%arg0: memref<4x128xf32, #tpu.memory_space<vmem>>, %arg1: memref<128x320xf32, #tpu.memory_space<vmem>>, %arg2: memref<33x320xf32, #tpu.memory_space<vmem>>, %arg3: memref<289x9xf32, #tpu.memory_space<vmem>>, %arg4: memref<2x12xf32, #tpu.memory_space<vmem>>) attributes {dimension_semantics = [], scalar_prefetch = 0 : i64, scratch_operands = 0 : i64, tpu.core_type = #tpu.core_type<tc>} {
    %c0 = arith.constant 0 : index
    %c0_0 = arith.constant 0 : index
    %0 = vector.load %arg0[%c0, %c0_0] : memref<4x128xf32, #tpu.memory_space<vmem>>, vector<4x128xf32>
    %1 = vector.extract_strided_slice %0 {offsets = [0, 33], sizes = [2, 2], strides = [1, 1]} : vector<4x128xf32> to vector<2x2xf32>
    %2 = vector.extract_strided_slice %0 {offsets = [0, 35], sizes = [2, 8], strides = [1, 1]} : vector<4x128xf32> to vector<2x8xf32>
    %c0_1 = arith.constant 0 : index
    %c0_2 = arith.constant 0 : index
    %3 = vector.load %arg1[%c0_1, %c0_2] : memref<128x320xf32, #tpu.memory_space<vmem>>, vector<128x320xf32>
    %cst = arith.constant dense<0.000000e+00> : vector<4x320xf32>
    %4 = tpu.matmul %0, %3, %cst {dimension_numbers = #tpu.dot_dimension_numbers<[1], [0], [0], [1], [0, 0, 1, 1], [], []>} : vector<4x128xf32>, vector<128x320xf32>, vector<4x320xf32> -> vector<4x320xf32>
    %5 = vector.extract_strided_slice %4 {offsets = [0, 288], sizes = [2, 32], strides = [1, 1]} : vector<4x320xf32> to vector<2x32xf32>
    %cst_3 = arith.constant 0.000000e+00 : f32
    %6 = vector.broadcast %cst_3 : f32 to vector<2x32xf32>
    %7 = arith.maximumf %5, %6 : vector<2x32xf32>
    %8 = vector.extract_strided_slice %4 {offsets = [2, 0], sizes = [2, 288], strides = [1, 1]} : vector<4x320xf32> to vector<2x288xf32>
    %c0_4 = arith.constant 0 : index
    %c0_5 = arith.constant 0 : index
    %9 = vector.load %arg2[%c0_4, %c0_5] : memref<33x320xf32, #tpu.memory_space<vmem>>, vector<32x320xf32>
    %cst_6 = arith.constant dense<0.000000e+00> : vector<2x320xf32>
    %10 = tpu.matmul %7, %9, %cst_6 {dimension_numbers = #tpu.dot_dimension_numbers<[1], [0], [0], [1], [0, 0, 1, 1], [], []>} : vector<2x32xf32>, vector<32x320xf32>, vector<2x320xf32> -> vector<2x320xf32>
    %c32 = arith.constant 32 : index
    %c0_7 = arith.constant 0 : index
    %11 = vector.load %arg2[%c32, %c0_7] : memref<33x320xf32, #tpu.memory_space<vmem>>, vector<1x320xf32>
    %12 = vector.broadcast %11 : vector<1x320xf32> to vector<2x320xf32>
    %13 = arith.addf %10, %12 : vector<2x320xf32>
    %14 = vector.extract_strided_slice %13 {offsets = [0, 288], sizes = [2, 2], strides = [1, 1]} : vector<2x320xf32> to vector<2x2xf32>
    %15 = vector.extract_strided_slice %14 {offsets = [0, 0], sizes = [2, 1], strides = [1, 1]} : vector<2x2xf32> to vector<2x1xf32>
    %16 = vector.extract_strided_slice %14 {offsets = [0, 1], sizes = [2, 1], strides = [1, 1]} : vector<2x2xf32> to vector<2x1xf32>
    %17 = arith.subf %15, %16 : vector<2x1xf32>
    %cst_8 = arith.constant 0.000000e+00 : f32
    %18 = vector.broadcast %cst_8 : f32 to vector<2x1xf32>
    %19 = arith.subf %18, %17 : vector<2x1xf32>
    %20 = math.exp %19 : vector<2x1xf32>
    %cst_9 = arith.constant 1.000000e+00 : f32
    %21 = vector.broadcast %cst_9 : f32 to vector<2x1xf32>
    %22 = arith.addf %21, %20 : vector<2x1xf32>
    %cst_10 = arith.constant 1.000000e+00 : f32
    %23 = vector.broadcast %cst_10 : f32 to vector<2x1xf32>
    %24 = arith.divf %23, %22 : vector<2x1xf32>
    %cst_11 = arith.constant 1.000000e+00 : f32
    %cst_12 = arith.constant 1.000000e-10 : f32
    %25 = arith.subf %cst_11, %cst_12 : f32
    %cst_13 = arith.constant 1.000000e-10 : f32
    %26 = vector.broadcast %cst_13 : f32 to vector<2x2xf32>
    %27 = arith.maximumf %26, %1 : vector<2x2xf32>
    %28 = vector.broadcast %25 : f32 to vector<2x2xf32>
    %29 = arith.minimumf %28, %27 : vector<2x2xf32>
    %30 = math.log %29 : vector<2x2xf32>
    %cst_14 = arith.constant 0.000000e+00 : f32
    %31 = vector.broadcast %cst_14 : f32 to vector<2x2xf32>
    %32 = arith.subf %31, %30 : vector<2x2xf32>
    %33 = math.log %32 : vector<2x2xf32>
    %cst_15 = arith.constant 0.000000e+00 : f32
    %34 = vector.broadcast %cst_15 : f32 to vector<2x2xf32>
    %35 = arith.subf %34, %33 : vector<2x2xf32>
    %cst_16 = arith.constant 2.000000e+00 : f32
    %36 = vector.broadcast %cst_16 : f32 to vector<2x1xf32>
    %37 = arith.mulf %36, %24 : vector<2x1xf32>
    %cst_17 = arith.constant 1.000000e+00 : f32
    %38 = vector.broadcast %cst_17 : f32 to vector<2x1xf32>
    %39 = arith.subf %37, %38 : vector<2x1xf32>
    %40 = vector.extract_strided_slice %35 {offsets = [0, 0], sizes = [2, 1], strides = [1, 1]} : vector<2x2xf32> to vector<2x1xf32>
    %41 = arith.addf %39, %40 : vector<2x1xf32>
    %42 = vector.extract_strided_slice %35 {offsets = [0, 1], sizes = [2, 1], strides = [1, 1]} : vector<2x2xf32> to vector<2x1xf32>
    %43 = arith.subf %41, %42 : vector<2x1xf32>
    %cst_18 = arith.constant 3.33333325 : f32
    %44 = vector.broadcast %cst_18 : f32 to vector<2x1xf32>
    %45 = arith.mulf %43, %44 : vector<2x1xf32>
    %cst_19 = arith.constant 0.000000e+00 : f32
    %46 = vector.broadcast %cst_19 : f32 to vector<2x1xf32>
    %47 = arith.subf %46, %45 : vector<2x1xf32>
    %48 = math.exp %47 : vector<2x1xf32>
    %cst_20 = arith.constant 1.000000e+00 : f32
    %49 = vector.broadcast %cst_20 : f32 to vector<2x1xf32>
    %50 = arith.addf %49, %48 : vector<2x1xf32>
    %cst_21 = arith.constant 1.000000e+00 : f32
    %51 = vector.broadcast %cst_21 : f32 to vector<2x1xf32>
    %52 = arith.divf %51, %50 : vector<2x1xf32>
    %cst_22 = arith.constant 1.000000e+00 : f32
    %53 = vector.broadcast %cst_22 : f32 to vector<2x1xf32>
    %54 = arith.subf %53, %52 : vector<2x1xf32>
    %55 = vector.extract_strided_slice %13 {offsets = [0, 0], sizes = [2, 288], strides = [1, 1]} : vector<2x320xf32> to vector<2x288xf32>
    %56 = arith.addf %8, %55 : vector<2x288xf32>
    %cst_23 = arith.constant 0.000000e+00 : f32
    %57 = vector.broadcast %cst_23 : f32 to vector<2x288xf32>
    %58 = arith.maximumf %56, %57 : vector<2x288xf32>
    %c0_24 = arith.constant 0 : index
    %c0_25 = arith.constant 0 : index
    %59 = vector.load %arg3[%c0_24, %c0_25] : memref<289x9xf32, #tpu.memory_space<vmem>>, vector<288x9xf32>
    %cst_26 = arith.constant dense<0.000000e+00> : vector<2x9xf32>
    %60 = tpu.matmul %58, %59, %cst_26 {dimension_numbers = #tpu.dot_dimension_numbers<[1], [0], [0], [1], [0, 0, 1, 1], [], []>} : vector<2x288xf32>, vector<288x9xf32>, vector<2x9xf32> -> vector<2x9xf32>
    %c288 = arith.constant 288 : index
    %c0_27 = arith.constant 0 : index
    %61 = vector.load %arg3[%c288, %c0_27] : memref<289x9xf32, #tpu.memory_space<vmem>>, vector<1x9xf32>
    %62 = vector.broadcast %61 : vector<1x9xf32> to vector<2x9xf32>
    %63 = arith.addf %60, %62 : vector<2x9xf32>
    %64 = vector.extract_strided_slice %63 {offsets = [0, 0], sizes = [2, 8], strides = [1, 1]} : vector<2x9xf32> to vector<2x8xf32>
    %65 = vector.extract_strided_slice %63 {offsets = [0, 8], sizes = [2, 1], strides = [1, 1]} : vector<2x9xf32> to vector<2x1xf32>
    %66 = vector.broadcast %65 : vector<2x1xf32> to vector<2x8xf32>
    %67 = arith.addf %64, %66 : vector<2x8xf32>
    %cst_28 = arith.constant dense<0.000000e+00> : vector<2xf32>
    %68 = vector.multi_reduction <add>, %64, %cst_28 [1] : vector<2x8xf32> to vector<2xf32>
    %69 = vector.shape_cast %68 : vector<2xf32> to vector<2x1xf32>
    %cst_29 = arith.constant 8.000000e+00 : f32
    %70 = vector.broadcast %cst_29 : f32 to vector<2x1xf32>
    %71 = arith.divf %69, %70 : vector<2x1xf32>
    %72 = vector.broadcast %71 : vector<2x1xf32> to vector<2x8xf32>
    %73 = arith.subf %67, %72 : vector<2x8xf32>
    %74 = vector.broadcast %52 : vector<2x1xf32> to vector<2x8xf32>
    %75 = arith.mulf %2, %74 : vector<2x8xf32>
    %cst_30 = arith.constant 1.000000e+00 : f32
    %76 = vector.broadcast %cst_30 : f32 to vector<2x8xf32>
    %77 = arith.subf %76, %2 : vector<2x8xf32>
    %78 = vector.broadcast %54 : vector<2x1xf32> to vector<2x8xf32>
    %79 = arith.mulf %77, %78 : vector<2x8xf32>
    %80 = arith.addf %75, %79 : vector<2x8xf32>
    %81 = arith.mulf %73, %80 : vector<2x8xf32>
    %82 = tpu.concatenate %14, %52, %54, %81 in 1 : vector<2x2xf32>, vector<2x1xf32>, vector<2x1xf32>, vector<2x8xf32> -> vector<2x12xf32>
    %c0_31 = arith.constant 0 : index
    %c0_32 = arith.constant 0 : index
    %83 = vector.load %arg4[%c0_31, %c0_32] : memref<2x12xf32, #tpu.memory_space<vmem>>, vector<2x12xf32>
    tpu.vector_store %arg4[%c0_31, %c0_32], %82 {strides = array<i32>} : memref<2x12xf32, #tpu.memory_space<vmem>>, vector<2x12xf32>,
    return
  }
}

</mosaic_0001>

<bundles_post_ra>
// kernel: dqn_forward.1
= control target key start
LH: loop header
LB: loop body
LE: loop exit
PB: predicated region body
PF: predicated region fallthrough
CT: control target
= control target key end

     0   :  { %v837_v0 = vmov 0.0   ;;  %vm838_vm0 = vmmov 0   ;;  %s839_s6 = smov 96   ;;  %vm241_vm1 = vcmask 261120   ;;  %s840_s21 = smov 127   ;;  %vm634_vm2 = vcmask 58368   ;;  %s1227_s1 = inlined_call_operand.vmem [shape: f32[128,320], index: 1, kind: input, shape index: {}]   ;;  %s1228_s0 = inlined_call_operand.vmem [shape: f32[4,128], index: 0, kind: input, shape index: {}]   ;;  %s1229_s2 = inlined_call_operand.vmem [shape: f32[33,320], index: 2, kind: input, shape index: {}]   ;;  %s1230_s3 = inlined_call_operand.vmem [shape: f32[289,9], index: 3, kind: input, shape index: {}]   ;;  %s1231_s4 = inlined_call_operand.vmem [shape: f32[2,12], index: 4, kind: output, shape index: {}]  }
   0x1   :  { %753 = vmatprep.subr.mxu1 %v837_v0  ;;  %v65_v1 = vld [vmem:[%s1227_s1 + $0x178] sm:$0xff]  ;;  %v62_v2 = vld [vmem:[%s1227_s1 + $0x160] sm:$0xff]  ;;  %785 = vmatprep.mubr.msk.f32.mxu1 %vm838_vm0, %v837_v0  ;;  %v59_v3 = vld [vmem:[%s1227_s1 + $0x148] sm:$0xff]  ;;  %s841_s22 = smov 126   ;;  %s845_s26 = smov 98   ;;  %vm673_vm3 = vcmask 15360  }
   0x2   :  { %754 = vmatpush3.msra.mxu1 %v65_v1  ;;  %130 = vmatprep.mubr.f32.mxu0 %v837_v0  ;;  %v56_v4 = vld [vmem:[%s1227_s1 + $0x130] sm:$0xff]  ;;  %v53_v5 = vld [vmem:[%s1227_s1 + $0x118] sm:$0xff]  ;;  %v50_v6 = vld [vmem:[%s1227_s1 + $0x100] sm:$0xff]  ;;  %s846_s27 = smov 99   ;;  %s847_s28 = smov 4   ;;  %vm675_vm4 = vcmask 23552  }
   0x3   :  { %755 = vmatprep.subr.mxu1 %v837_v0  ;;  %v47_v7 = vld [vmem:[%s1227_s1 + $0xe8] sm:$0xff]  ;;  %v44_v8 = vld [vmem:[%s1227_s1 + $0xd0] sm:$0xff]  ;;  %v41_v9 = vld [vmem:[%s1227_s1 + $0xb8] sm:$0xff]  ;;  %vm677_vm5 = vcmask 31744   ;;  %vm679_vm6 = vcmask 91136  }
   0x4   :  { %756 = vmatpush3.msra.mxu1 %v62_v2  ;;  %v38_v10 = vld [vmem:[%s1227_s1 + $0xa0] sm:$0xff]  ;;  %v35_v11 = vld [vmem:[%s1227_s1 + $0x88] sm:$0xff]  ;;  %v32_v12 = vld [vmem:[%s1227_s1 + $0x70] sm:$0xff] }
   0x5   :  { %757 = vmatprep.subr.mxu1 %v837_v0  ;;  %v29_v13 = vld [vmem:[%s1227_s1 + $0x58] sm:$0xff]  ;;  %v26_v14 = vld [vmem:[%s1227_s1 + $0x40] sm:$0xff]  ;;  %v23_v15 = vld [vmem:[%s1227_s1 + $0x28] sm:$0xff] }
   0x6   :  { %758 = vmatpush3.msra.mxu1 %v59_v3  ;;  %v20_v16 = vld [vmem:[%s1227_s1 + $0x10] sm:$0xff]  ;;  %v942_v17 = vld [vmem:[%s1228_s0] sm:$0xf]  ;;  %v63_v19 = vld [vmem:[%s1227_s1 + $0x168] sm:$0xff] }
   0x7   :  { %759 = vmatprep.subr.mxu1 %v837_v0  ;;  %v64_v18 = vld [vmem:[%s1227_s1 + $0x170] sm:$0xff]  ;;  %v61_v20 = vld [vmem:[%s1227_s1 + $0x158] sm:$0xff]  ;;  %v58_v22 = vld [vmem:[%s1227_s1 + $0x140] sm:$0xff] }
   0x8   :  { %760 = vmatpush3.msra.mxu1 %v56_v4  ;;  %66 = vmatprep.subr.mxu0 %v64_v18  ;;  %v60_v21 = vld [vmem:[%s1227_s1 + $0x150] sm:$0xff]  ;;  %v57_v23 = vld [vmem:[%s1227_s1 + $0x138] sm:$0xff]  ;;  %v55_v24 = vld [vmem:[%s1227_s1 + $0x128] sm:$0xff] }
   0x9   :  { %761 = vmatprep.subr.mxu1 %v837_v0  ;;  %67 = vmatpush1.msra.mxu0 %v63_v19  ;;  %v54_v25 = vld [vmem:[%s1227_s1 + $0x120] sm:$0xff]  ;;  %v52_v26 = vld [vmem:[%s1227_s1 + $0x110] sm:$0xff]  ;;  %v51_v28 = vld [vmem:[%s1227_s1 + $0x108] sm:$0xff] }
   0xa   :  { %762 = vmatpush3.msra.mxu1 %v53_v5  ;;  %68 = vmatprep.subr.mxu0 %v61_v20  ;;  %v218_v27 = vld [vmem:[%s1229_s2 + $0x50] sm:$0xff]  ;;  %v217_v29 = vld [vmem:[%s1229_s2 + $0x48] sm:$0xff]  ;;  %v49_v30 = vld [vmem:[%s1227_s1 + $0xf8] sm:$0xff] }
   0xb   :  { %763 = vmatprep.subr.mxu1 %v837_v0  ;;  %69 = vmatpush1.msra.mxu0 %v60_v21  ;;  %v215_v31 = vld [vmem:[%s1229_s2 + $0x38] sm:$0xff]  ;;  %v214_v32 = vld [vmem:[%s1229_s2 + $0x30] sm:$0xff]  ;;  %v212_v34 = vld [vmem:[%s1229_s2 + $0x20] sm:$0xff] }
   0xc   :  { %764 = vmatpush3.msra.mxu1 %v50_v6  ;;  %70 = vmatprep.subr.mxu0 %v58_v22  ;;  %v48_v33 = vld [vmem:[%s1227_s1 + $0xf0] sm:$0xff]  ;;  %v46_v35 = vld [vmem:[%s1227_s1 + $0xe0] sm:$0xff]  ;;  %v211_v36 = vld [vmem:[%s1229_s2 + $0x18] sm:$0xff] }
   0xd   :  { %765 = vmatprep.subr.mxu1 %v837_v0  ;;  %71 = vmatpush1.msra.mxu0 %v57_v23  ;;  %v209_v37 = vld [vmem:[%s1229_s2 + $0x8] sm:$0xff]  ;;  %v45_v38 = vld [vmem:[%s1227_s1 + $0xd8] sm:$0xff]  ;;  %v208_v39 = vld [vmem:[%s1229_s2] sm:$0xff] }
   0xe   :  { %766 = vmatpush3.msra.mxu1 %v47_v7  ;;  %72 = vmatprep.subr.mxu0 %v55_v24  ;;  %v43_v40 = vld [vmem:[%s1227_s1 + $0xc8] sm:$0xff]  ;;  %v42_v41 = vld [vmem:[%s1227_s1 + $0xc0] sm:$0xff]  ;;  %v40_v42 = vld [vmem:[%s1227_s1 + $0xb0] sm:$0xff] }
   0xf   :  { %767 = vmatprep.subr.mxu1 %v837_v0  ;;  %73 = vmatpush1.msra.mxu0 %v54_v25  ;;  %v39_v43 = vld [vmem:[%s1227_s1 + $0xa8] sm:$0xff]  ;;  %v37_v44 = vld [vmem:[%s1227_s1 + $0x98] sm:$0xff]  ;;  %v36_v45 = vld [vmem:[%s1227_s1 + $0x90] sm:$0xff] }
  0x10   :  { %768 = vmatpush3.msra.mxu1 %v44_v8  ;;  %74 = vmatprep.subr.mxu0 %v52_v26  ;;  %v34_v46 = vld [vmem:[%s1227_s1 + $0x80] sm:$0xff]  ;;  %v33_v47 = vld [vmem:[%s1227_s1 + $0x78] sm:$0xff]  ;;  %v31_v48 = vld [vmem:[%s1227_s1 + $0x68] sm:$0xff] }
  0x11   :  { %769 = vmatprep.subr.mxu1 %v837_v0  ;;  %75 = vmatpush1.msra.mxu0 %v51_v28  ;;  %v30_v49 = vld [vmem:[%s1227_s1 + $0x60] sm:$0xff]  ;;  %v28_v50 = vld [vmem:[%s1227_s1 + $0x50] sm:$0xff]  ;;  %v27_v51 = vld [vmem:[%s1227_s1 + $0x48] sm:$0xff] }
  0x12   :  { %770 = vmatpush3.msra.mxu1 %v41_v9  ;;  %76 = vmatprep.subr.mxu0 %v49_v30  ;;  %v25_v52 = vld [vmem:[%s1227_s1 + $0x38] sm:$0xff]  ;;  %v24_v53 = vld [vmem:[%s1227_s1 + $0x30] sm:$0xff]  ;;  %v22_v54 = vld [vmem:[%s1227_s1 + $0x20] sm:$0xff] }
  0x13   :  { %771 = vmatprep.subr.mxu1 %v837_v0  ;;  %77 = vmatpush1.msra.mxu0 %v48_v33  ;;  %v21_v55 = vld [vmem:[%s1227_s1 + $0x18] sm:$0xff]  ;;  %v19_v56 = vld [vmem:[%s1227_s1 + $0x8] sm:$0xff]  ;;  %v18_v57 = vld [vmem:[%s1227_s1] sm:$0xff] }
  0x14   :  { %772 = vmatpush3.msra.mxu1 %v38_v10  ;;  %78 = vmatprep.subr.mxu0 %v46_v35  ;;  %v468_v58 = vld [vmem:[%s1230_s3 + $0xf8] sm:$0xff]  ;;  %v467_v60 = vld [vmem:[%s1230_s3 + $0xf0] sm:$0xff]  ;;  %v466_v1 = vld [vmem:[%s1230_s3 + $0xe8] sm:$0xff] }
  0x15   :  { %773 = vmatprep.subr.mxu1 %v837_v0  ;;  %79 = vmatpush1.msra.mxu0 %v45_v38  ;;  %v452_v59 = vld [vmem:[%s1230_s3 + $0x78] sm:$0xff]  ;;  %v451_v62 = vld [vmem:[%s1230_s3 + $0x70] sm:$0xff]  ;;  %v450_v3 = vld [vmem:[%s1230_s3 + $0x68] sm:$0xff] }
  0x16   :  { %774 = vmatpush3.msra.mxu1 %v35_v11  ;;  %80 = vmatprep.subr.mxu0 %v43_v40  ;;  %v465_v4 = vld [vmem:[%s1230_s3 + $0xe0] sm:$0xff]  ;;  %v464_v6 = vld [vmem:[%s1230_s3 + $0xd8] sm:$0xff]  ;;  %v463_v8 = vld [vmem:[%s1230_s3 + $0xd0] sm:$0xff] }
  0x17   :  { %775 = vmatprep.subr.mxu1 %v837_v0  ;;  %81 = vmatpush1.msra.mxu0 %v42_v41  ;;  %v449_v5 = vld [vmem:[%s1230_s3 + $0x60] sm:$0xff]  ;;  %v448_v7 = vld [vmem:[%s1230_s3 + $0x58] sm:$0xff]  ;;  %v447_v9 = vld [vmem:[%s1230_s3 + $0x50] sm:$0xff] }
  0x18   :  { %776 = vmatpush3.msra.mxu1 %v32_v12  ;;  %82 = vmatprep.subr.mxu0 %v40_v42  ;;  %v462_v10 = vld [vmem:[%s1230_s3 + $0xc8] sm:$0xff]  ;;  %v461_v12 = vld [vmem:[%s1230_s3 + $0xc0] sm:$0xff]  ;;  %v210_v21 = vld [vmem:[%s1229_s2 + $0x10] sm:$0xff] }
  0x19   :  { %777 = vmatprep.subr.mxu1 %v837_v0  ;;  %83 = vmatpush1.msra.mxu0 %v39_v43  ;;  %v446_v11 = vld [vmem:[%s1230_s3 + $0x48] sm:$0xff]  ;;  %v216_v19 = vld [vmem:[%s1229_s2 + $0x40] sm:$0xff]  ;;  %v459_v22 = vld [vmem:[%s1230_s3 + $0xb0] sm:$0xff] }
  0x1a   :  { %778 = vmatpush3.msra.mxu1 %v29_v13  ;;  %84 = vmatprep.subr.mxu0 %v37_v44  ;;  %v445_v13 = vld [vmem:[%s1230_s3 + $0x40] sm:$0xff]  ;;  %v213_v20 = vld [vmem:[%s1229_s2 + $0x28] sm:$0xff]  ;;  %v443_v23 = vld [vmem:[%s1230_s3 + $0x30] sm:$0xff] }
  0x1b   :  { %779 = vmatprep.subr.mxu1 %v837_v0  ;;  %85 = vmatpush1.msra.mxu0 %v36_v45  ;;  %v458_v24 = vld [vmem:[%s1230_s3 + $0xa8] sm:$0xff]  ;;  %v457_v26 = vld [vmem:[%s1230_s3 + $0xa0] sm:$0xff]  ;;  %v456_v28 = vld [vmem:[%s1230_s3 + $0x98] sm:$0xff] }
  0x1c   :  { %780 = vmatpush3.msra.mxu1 %v26_v14  ;;  %86 = vmatprep.subr.mxu0 %v34_v46  ;;  %v460_v14 = vld [vmem:[%s1230_s3 + $0xb8] sm:$0xff]  ;;  %v442_v25 = vld [vmem:[%s1230_s3 + $0x28] sm:$0xff]  ;;  %v455_v30 = vld [vmem:[%s1230_s3 + $0x90] sm:$0xff] }
  0x1d   :  { %781 = vmatprep.subr.mxu1 %v837_v0  ;;  %87 = vmatpush1.msra.mxu0 %v33_v47  ;;  %v454_v33 = vld [vmem:[%s1230_s3 + $0x88] sm:$0xff]  ;;  %v472_v35 = vld [vmem:[%s1230_s3 + $0x118] sm:$0xff]  ;;  %v437_v38 = vld [vmem:[%s1230_s3] sm:$0xff] }
  0x1e   :  { %782 = vmatpush3.msra.mxu1 %v23_v15  ;;  %88 = vmatprep.subr.mxu0 %v31_v48  ;;  %v444_v15 = vld [vmem:[%s1230_s3 + $0x38] sm:$0xff]  ;;  %v470_v40 = vld [vmem:[%s1230_s3 + $0x108] sm:$0xff]  ;;  %v469_v41 = vld [vmem:[%s1230_s3 + $0x100] sm:$0xff]  ;;  %v223_v48 = vlaneseq }
  0x1f   :  { %783 = vmatprep.subr.mxu1 %v837_v0  ;;  %89 = vmatpush1.msra.mxu0 %v30_v49 }
  0x20   :  { %784 = vmatpush3.msra.mxu1 %v20_v16  ;;  %90 = vmatprep.subr.mxu0 %v28_v50  ;;  %v219_v16 = vld [vmem:[%s1229_s2 + $0x58] sm:$0xff]  ;;  %v224_v49 = vshrl.u32 %v223_v48, 7 }
  0x21   :  { %786 = vmatmul.mubr.f32.vlgmr.msra.gmra.mxu1 %v942_v17  ;;  %268 = vmatprep.subr.mxu1 %v218_v27  ;;  %v441_v27 = vld [vmem:[%s1230_s3 + $0x20] sm:$0xff] }
  0x22   :  { %308 = vmatprep.mubr.f32.mxu1 %v837_v0  ;;  %269 = vmatpush1.msra.mxu1 %v217_v29  ;;  %v440_v29 = vld [vmem:[%s1230_s3 + $0x18] sm:$0xff]  ;;  %v225_v50 = vsub.s32 0, %v224_v49 }
  0x23   :  { %270 = vmatprep.subr.mxu1 %v215_v31  ;;  %91 = vmatpush1.msra.mxu0 %v27_v51  ;;  %v439_v31 = vld [vmem:[%s1230_s3 + $0x10] sm:$0xff]  ;;  %v229_v51 = vsub.s32 1, %v224_v49 }
  0x24   :  { %271 = vmatpush1.msra.mxu1 %v214_v32  ;;  %92 = vmatprep.subr.mxu0 %v25_v52  ;;  %v396_v32 = vmax.f32 %v942_v17, 1e-10 }
  0x25   :  { %272 = vmatprep.subr.mxu1 %v212_v34  ;;  %93 = vmatpush1.msra.mxu0 %v24_v53  ;;  %v438_v34 = vld [vmem:[%s1230_s3 + $0x8] sm:$0xff] }
  0x26   :  { %273 = vmatpush1.msra.mxu1 %v211_v36  ;;  %94 = vmatprep.subr.mxu0 %v22_v54  ;;  %v397_v36 = vmin.f32 %v396_v32, 1.0 }
  0x27   :  { %274 = vmatprep.subr.mxu1 %v209_v37  ;;  %95 = vmatpush1.msra.mxu0 %v21_v55  ;;  %v453_v37 = vld [vmem:[%s1230_s3 + $0x80] sm:$0xff] }
  0x28   :  { %275 = vmatpush1.msra.mxu1 %v208_v39  ;;  %96 = vmatprep.subr.mxu0 %v19_v56  ;;  %v471_v39 = vld [vmem:[%s1230_s3 + $0x110] sm:$0xff]  ;;  %825 = vlog2.f32 %v397_v36 }
  0x29   :  { %788 = vmatprep.subr.mxu1 %v837_v0  ;;  %97 = vmatpush1.msra.mxu0 %v18_v57  ;;  %v233_v57 = vsub.s32 2, %v224_v49 }
  0x2a   :  { %131 = vmatmul.mubr.f32.vlgmr.msra.gmra.mxu0 %v942_v17  ;;  %713 = vmatprep.subr.mxu0 %v468_v58 }
  0x2b   :  { %714 = vmatpush3.msra.mxu0 %v452_v59 }
  0x2c   :  { %715 = vmatprep.subr.mxu0 %v467_v60 }
  0x2d   :  { %716 = vmatpush3.msra.mxu0 %v451_v62 }
  0x2e   :  { %717 = vmatprep.subr.mxu0 %v466_v1 }
  0x2f   :  { %718 = vmatpush3.msra.mxu0 %v450_v3 }
  0x30   :  { %719 = vmatprep.subr.mxu0 %v465_v4 }
  0x31   :  { %720 = vmatpush3.msra.mxu0 %v449_v5 }
  0x32   :  { %721 = vmatprep.subr.mxu0 %v464_v6 }
  0x33   :  { %722 = vmatpush3.msra.mxu0 %v448_v7 }
  0x34   :  { %723 = vmatprep.subr.mxu0 %v463_v8 }
  0x35   :  { %724 = vmatpush3.msra.mxu0 %v447_v9  ;;  %v826_v42 = vpop.eup %825 }
  0x36   :  { %725 = vmatprep.subr.mxu0 %v462_v10  ;;  %v399_v43 = vmul.f32 0.6931472, %v826_v42 }
  0x37   :  { %726 = vmatpush3.msra.mxu0 %v446_v11 }
  0x38   :  { %727 = vmatprep.subr.mxu0 %v461_v12  ;;  %v400_v44 = vsub.f32 0.0, %v399_v43 }
  0x39   :  { %728 = vmatpush3.msra.mxu0 %v445_v13 }
  0x3a   :  { %729 = vmatprep.subr.mxu0 %v460_v14  ;;  %827 = vlog2.f32 %v400_v44 }
  0x3b   :  { %730 = vmatpush3.msra.mxu0 %v444_v15  ;;  %v842_v15 = vmov 32  }
  0x3c   :  { %731 = vmatprep.subr.mxu0 %v459_v22  ;;  %821 = vset.pattern.permute.xlu0 %v842_v15 }
  0x3d   :  { %732 = vmatpush3.msra.mxu0 %v443_v23  ;;  %822 = vset.pattern.permute.xlu1 %v842_v15 }
  0x3e   :  { %733 = vmatprep.subr.mxu0 %v458_v24 }
  0x3f   :  { %734 = vmatpush3.msra.mxu0 %v442_v25 }
  0x40   :  { %735 = vmatprep.subr.mxu0 %v457_v26 }
  0x41   :  { %736 = vmatpush3.msra.mxu0 %v441_v27 }
  0x42   :  { %737 = vmatprep.subr.mxu0 %v456_v28 }
  0x43   :  { %738 = vmatpush3.msra.mxu0 %v440_v29 }
  0x44   :  { %739 = vmatprep.subr.mxu0 %v455_v30 }
  0x45   :  { %740 = vmatpush3.msra.mxu0 %v439_v31 }
  0x46   :  { %741 = vmatprep.subr.mxu0 %v454_v33 }
  0x47   :  { %742 = vmatpush3.msra.mxu0 %v438_v34  ;;  %v828_v45 = vpop.eup %827 }
  0x48   :  { %743 = vmatprep.subr.mxu0 %v453_v37  ;;  %v402_v46 = vmul.f32 0.6931472, %v828_v45 }
  0x49   :  { %744 = vmatpush3.msra.mxu0 %v437_v38  ;;  %v689_v38 = vld [vmem:[%s1230_s3 + $0x120] ss:$0 sm:$0xff]  ;;  %s844_s3 = smov 93  }
  0x4a   :  { %v403_v47 = vsub.f32 0.0, %v402_v46  ;;  %v647_v46 = vsub.f32 1.0, %v942_v17 }
  0x4c   :  { %407 = vrot.lane.b32.xlu1 %v403_v47, %s840_s21 }
  0x50   :  { %411 = vrot.lane.b32.xlu1 %v403_v47, %s841_s22 }
  0xbe   :  { %v408_v23 = vpop.permute.xlu1 %407 }
  0xc2   :  { %v412_v26 = vpop.permute.xlu1 %411 }
  0xe1   :  { %v1078_v61 = vpop.f32.mrf.mxu1 }
  0xe2   :  { %v207_v63 = vmax.f32 %v1078_v61, 0.0 }
  0xe3   :  { %v787_v2 = vpop.f32.mrf.mxu1 }
  0xe4   :  { %239 = vrot.lane.b32.xlu0 %v207_v63, %s839_s6 }
  0xea   :  { %v132_v55 = vpop.f32.mrf.mxu0 }
  0xec   :  { %v134_v62 = vpop.f32.mrf.mxu0 }
 0x156   :  { %v240_v18 = vpop.permute.xlu0 %239 }
 0x157   :  { %686 = vmatmul.mubr.msk.f32.vlgmr.msra.gmra.mxu1 %vm241_vm1, %v240_v18 }
 0x158   :  { %789 = vmatpush3.msra.mxu1 %v219_v16  ;;  %796 = vmatprep.mubr.msk.f32.mxu1 %vm838_vm0, %v837_v0 }
 0x159   :  { %790 = vmatprep.subr.mxu1 %v837_v0 }
 0x15a   :  { %791 = vmatpush3.msra.mxu1 %v216_v19 }
 0x15b   :  { %792 = vmatprep.subr.mxu1 %v837_v0 }
 0x15c   :  { %793 = vmatpush3.msra.mxu1 %v213_v20 }
 0x15d   :  { %794 = vmatprep.subr.mxu1 %v837_v0 }
 0x15e   :  { %795 = vmatpush3.msra.mxu1 %v210_v21 }
 0x15f   :  { %797 = vmatmul.mubr.msk.f32.vlgmr.msra.gmra.mxu1 %vm241_vm1, %v240_v18  ;;  %799 = vmatprep.subr.mxu1 %v837_v0 }
 0x160   :  { %807 = vmatprep.mubr.msk.f32.mxu1 %vm838_vm0, %v837_v0  ;;  %800 = vmatpush3.msra.mxu1 %v472_v35 }
 0x161   :  { %801 = vmatprep.subr.mxu1 %v837_v0 }
 0x162   :  { %802 = vmatpush3.msra.mxu1 %v471_v39 }
 0x163   :  { %803 = vmatprep.subr.mxu1 %v837_v0 }
 0x164   :  { %804 = vmatpush3.msra.mxu1 %v470_v40  ;;  %v843_v40 = vmov 8  }
 0x165   :  { %805 = vmatprep.subr.mxu1 %v837_v0  ;;  %v685_v0 = vld [vmem:[%s1229_s2 + $0x60] ss:$8 sm:$0x7] }
 0x166   :  { %806 = vmatpush3.msra.mxu1 %v469_v41  ;;  %v226_v52 = vrot.slane %v685_v0, %v225_v50  ;;  %v230_v53 = vrot.slane %v685_v0, %v229_v51  ;;  %v234_v2 = vrot.slane %v685_v0, %v233_v57 }
 0x217   :  { %v310_v54 = vpop.f32.mrf.mxu1 }
 0x218   :  { %v311_v56 = vadd.f32 %v310_v54, %v226_v52 }
 0x219   :  { %v312_v58 = vpop.f32.mrf.mxu1 }
 0x21a   :  { %v425_v59 = vrot.slane %v311_v56, 6  ;;  %v313_v60 = vadd.f32 %v312_v58, %v230_v53 }
 0x21c   :  { %v426_v63 = vrot.slane %v313_v60, 6  ;;  %v431_v1 = vadd.f32 %v425_v59, %v132_v55 }
 0x21e   :  { %v432_v3 = vadd.f32 %v426_v63, %v134_v62  ;;  %v434_v4 = vmax.f32 %v431_v1, 0.0 }
 0x21f   :  { %v381_v5 = vpop.f32.mrf.mxu1 }
 0x220   :  { %v435_v6 = vmax.f32 %v432_v3, 0.0  ;;  %v1210_v7 = vadd.f32 %v381_v5, %v234_v2  ;;  %v481_v11 = vrot.slane %v434_v4, 2 }
 0x221   :  { %v798_v8 = vpop.f32.mrf.mxu1 }
 0x222   :  { %v482_v9 = vrot.slane %v435_v6, 2  ;;  %v427_v10 = vrot.slane %v1210_v7, 6  ;;  %386 = vrot.lane.b32.xlu0 %v1210_v7, %s840_s21 }
 0x224   :  { %v433_v12 = vadd.f32 %v427_v10, %v1078_v61  ;;  %552 = vmatprep.mubr.f32.mxu0 %v482_v9 }
 0x225   :  { %553 = vmatmul.mubr.f32.vlgmr.msra.gmra.mxu0 %v481_v11 }
 0x226   :  { %v436_v13 = vmax.f32 %v433_v12, 0.0 }
 0x228   :  { %v483_v14 = vrot.slane %v436_v13, 2 }
 0x22a   :  { %808 = vmatmul.mubr.msk.f32.vlgmr.msra.gmra.mxu1 %vm241_vm1, %v483_v14 }
 0x294   :  { %v387_v16 = vpop.permute.xlu0 %386 }
 0x295   :  { %v389_v18 = vsub.f32 %v1210_v7, %v387_v16 }
 0x297   :  { %v390_v19 = vsub.f32 0.0, %v389_v18 }
 0x299   :  { %v391_v20 = vmul.f32 1.442695, %v390_v19 }
 0x29b   :  { %829 = vpow2.f32 %v391_v20 }
 0x2a8   :  { %v830_v21 = vpop.eup %829 }
 0x2a9   :  { %v393_v22 = vadd.f32 1.0, %v830_v21 }
 0x2ab   :  { %831 = vrcp.f32 %v393_v22 }
 0x2b8   :  { %v832_v61 = vpop.eup %831 }
 0x2b9   :  { %v404_v24 = vmul.f32 2.0, %v832_v61 }
 0x2bb   :  { %v688_v25 = vadd.f32 -1.0, %v404_v24 }
 0x2bd   :  { %v410_v27 = vadd.f32 %v688_v25, %v408_v23 }
 0x2bf   :  { %v414_v28 = vsub.f32 %v410_v27, %v412_v26 }
 0x2c1   :  { %v415_v29 = vmul.f32 3.3333333, %v414_v28 }
 0x2c3   :  { %v416_v30 = vsub.f32 0.0, %v415_v29 }
 0x2c5   :  { %v417_v31 = vmul.f32 1.442695, %v416_v30 }
 0x2c7   :  { %833 = vpow2.f32 %v417_v31 }
 0x2d4   :  { %v834_v32 = vpop.eup %833 }
 0x2d5   :  { %v419_v33 = vadd.f32 1.0, %v834_v32 }
 0x2d7   :  { %835 = vrcp.f32 %v419_v33 }
 0x2e4   :  { %v836_v34 = vpop.eup %835 }
 0x2e5   :  { %643 = vperm.xlu0 %821, %v836_v34   ;;  %v745_v35 = vpop.f32.mrf.mxu0  ;;  %v422_v36 = vsub.f32 1.0, %v836_v34 }
 0x2e7   :  { %650 = vperm.xlu1 %822, %v422_v36   ;;  %v746_v37 = vpop.f32.mrf.mxu0 }
 0x2e8   :  { %v747_v39 = vadd.f32 %v746_v37, %v745_v35 }
 0x2e9   :  { %823 = vset.pattern.permute.xlu0 %v843_v40 }
 0x2ea   :  { %v555_v41 = vadd.f32 %v747_v39, %v689_v38  ;;  %v624_v42 = vpop.f32.mrf.mxu1 }
 0x2ec   :  { %v625_v43 = vadd.f32 %v624_v42, %v555_v41  ;;  %v809_v44 = vpop.f32.mrf.mxu1 }
 0x2ee   :  { %630 = vperm.xlu0 %823, %v625_v43   ;;  %v635_v45 = vsel %vm634_vm2, %v625_v43, 0.0 }
 0x2f2   :  { %824 = vset.pattern.permute.xlu0 %v842_v15 }
 0x30b   :  { %636 = vadd.xlane.f32.xlu1 %v635_v45 }
 0x360   :  { %v644_v47 = vpop.permute.xlu0 %643 }
 0x361   :  { %v646_v49 = vmul.f32 %v644_v47, %v942_v17 }
 0x362   :  { %v651_v48 = vpop.permute.xlu1 %650 }
 0x363   :  { %v653_v50 = vmul.f32 %v651_v48, %v647_v46 }
 0x365   :  { %v654_v0 = vadd.f32 %v653_v50, %v646_v49 }
 0x367   :  { %656 = vrot.lane.b32.xlu0 %v654_v0, %s844_s3 }
 0x369   :  { %v631_v52 = vpop.permute.xlu0 %630 }
 0x36a   :  { %v633_v54 = vadd.f32 %v631_v52, %v625_v43 }
 0x36b   :  { %660 = vrot.lane.b32.xlu0 %v1210_v7, %s839_s6 }
 0x36f   :  { %663 = vrot.lane.b32.xlu0 %v836_v34, %s845_s26 }
 0x373   :  { %666 = vrot.lane.b32.xlu0 %v422_v36, %s846_s27 }
 0x394   :  { %v637_v51 = vpop.xlane.xlu1 %636 }
 0x395   :  { %v639_v53 = vmul.f32 0.125, %v637_v51 }
 0x397   :  { %v640_v55 = vsub.f32 %v633_v54, %v639_v53 }
 0x3d9   :  { %v657_v56 = vpop.permute.xlu0 %656 }
 0x3da   :  { %v659_v57 = vmul.f32 %v657_v56, %v640_v55 }
 0x3dc   :  { %670 = vrot.lane.b32.xlu0 %v659_v57, %s847_s28 }
 0x3dd   :  { %v661_v17 = vpop.permute.xlu0 %660 }
 0x3e1   :  { %v664_v58 = vpop.permute.xlu0 %663 }
 0x3e2   :  { %v674_v60 = vsel %vm673_vm3, %v661_v17, %v664_v58 }
 0x3e5   :  { %v667_v59 = vpop.permute.xlu0 %666 }
 0x3e6   :  { %v676_v62 = vsel %vm675_vm4, %v674_v60, %v667_v59 }
 0x44e   :  { %v671_v63 = vpop.permute.xlu0 %670 }
 0x44f   :  { %v678_v1 = vsel %vm677_vm5, %v676_v62, %v671_v63 }
 0x450   :  { %680 = vst.msk [vmem:[%s1231_s4] sm:$0x3] %vm679_vm6, %v678_v1 }

</bundles_post_ra>
